<compile_context>
chip_gen: v6e
topology: v6e:2x2x1
jax: 0.10.0
libtpu: 0.0.40
codegen_flags: <defaults>
</compile_context>

<pallas_src>
import functools

import jax
import jax.numpy as jnp
from jax.experimental import pallas as pl
from jax.experimental.pallas import tpu as pltpu


def _swad_kernel(x_ref, w1_ref, b1_ref, w2_ref, b2_ref, o_ref):
    # x_ref : (Cin, tS)        activation slab, NCL-native (no wrapper transpose)
    # w1_ref: (256, Cin)       conv1 weight  (Cout x Cin), compute dtype
    # b1_ref: (256, 1)         conv1 bias, f32
    # w2_ref: (Cout_pad, 256)  conv_swad weight (8-sublane aligned), compute dtype
    # b2_ref: (Cout_pad, 1)    conv_swad bias (padded), f32
    # o_ref : (Cout_pad, tS)   f32 output slab, NCL orientation
    h = jnp.dot(w1_ref[...], x_ref[...], preferred_element_type=jnp.float32)
    h = jnp.maximum(h + b1_ref[...], 0.0)                        # conv1 + ReLU (f32)
    y = jnp.dot(w2_ref[...], h.astype(w2_ref.dtype),
                preferred_element_type=jnp.float32)              # conv_swad
    o_ref[...] = (y + b2_ref[...]).astype(o_ref.dtype)


def swad_forward(vp_features, params, num_angle, num_depth, *,
                 seed_tile=None, use_bf16=True):
    """vp_features: (B, 256, num_seed) float32 -> dict of (B, S, A, D) preds."""
    B, Cin, S = vp_features.shape
    assert Cin == 256
    Cout = 2 * num_angle * num_depth
    Cout_pad = ((Cout + 7) // 8) * 8            # sublane alignment only (not 128)

    # Seed tile: whole S when small (full-extent blocks are always legal),
    # otherwise a multiple of 128 so loads/stores are lane-dense.
    if seed_tile is None:
        seed_tile = S if S <= 1024 else 512
    tS = seed_tile
    S_pad = pl.cdiv(S, tS) * tS

    x = vp_features
    if S_pad != S:
        x = jnp.pad(x, ((0, 0), (0, 0), (0, S_pad - S)))

    compute_dtype = jnp.bfloat16 if use_bf16 else jnp.float32
    x = x.astype(compute_dtype)
    w1 = params["w1"].astype(compute_dtype)                       # (256, Cin)
    b1 = params["b1"].astype(jnp.float32).reshape(256, 1)
    w2 = params["w2"]                                             # (Cout, 256)
    b2 = params["b2"].astype(jnp.float32).reshape(Cout, 1)
    if Cout_pad != Cout:
        w2 = jnp.pad(w2, ((0, Cout_pad - Cout), (0, 0)))
        b2 = jnp.pad(b2, ((0, Cout_pad - Cout), (0, 0)))
    w2 = w2.astype(compute_dtype)

    grid = (B, S_pad // tS)
    itemsize = jnp.dtype(compute_dtype).itemsize
    cost = pl.CostEstimate(
        flops=2 * B * S_pad * (Cin * 256 + 256 * Cout_pad),
        transcendentals=0,
        bytes_accessed=(B * Cin * S_pad * itemsize                 # activations in
                        + (256 * Cin + Cout_pad * 256) * itemsize  # weights
                        + B * Cout_pad * S_pad * 4),               # f32 out
    )

    out = pl.pallas_call(
        _swad_kernel,
        out_shape=jax.ShapeDtypeStruct((B, Cout_pad, S_pad), jnp.float32),
        grid_spec=pltpu.PrefetchScalarGridSpec(
            num_scalar_prefetch=0,
            grid=grid,
            in_specs=[
                pl.BlockSpec((None, Cin, tS), lambda b, s: (b, 0, s)),
                pl.BlockSpec((256, Cin), lambda b, s: (0, 0)),
                pl.BlockSpec((256, 1), lambda b, s: (0, 0)),
                pl.BlockSpec((Cout_pad, 256), lambda b, s: (0, 0)),
                pl.BlockSpec((Cout_pad, 1), lambda b, s: (0, 0)),
            ],
            out_specs=pl.BlockSpec((None, Cout_pad, tS), lambda b, s: (b, 0, s)),
        ),
        compiler_params=pltpu.CompilerParams(
            dimension_semantics=("parallel", "parallel")),
        cost_estimate=cost,
    )(x, w1, b1, w2, b2)

    # Output is already NCL (like the PyTorch conv output), so the glue below is
    # exactly the PyTorch view(B,2,A,D,S).permute(0,1,4,2,3). Under jit this
    # slice+reshape+transpose fuses into a single pass.
    y = out[:, :Cout, :S].reshape(B, 2, num_angle, num_depth, S)
    y = jnp.transpose(y, (0, 1, 4, 2, 3))                  # (B, 2, S, A, D)

    end_points = {}
    end_points["grasp_score_pred"] = y[:, 0]               # (B, S, A, D)
    end_points["grasp_width_pred"] = y[:, 1]               # (B, S, A, D)
    return end_points


def init_params(key, num_angle, num_depth):
    Cout = 2 * num_angle * num_depth
    k1, k2, k3, k4 = jax.random.split(key, 4)
    # Stored in natural conv1d layout (Cout, Cin); kernel computes W @ x directly.
    w1 = jax.random.normal(k1, (256, 256), jnp.float32) * 0.05
    b1 = jax.random.normal(k2, (256,), jnp.float32) * 0.05
    w2 = jax.random.normal(k3, (Cout, 256), jnp.float32) * 0.05
    b2 = jax.random.normal(k4, (Cout,), jnp.float32) * 0.05
    return {"w1": w1, "b1": b1, "w2": w2, "b2": b2}


def _reference(vp_features, params, num_angle, num_depth):
    # Plain-JAX replica of the PyTorch forward (NCL throughout).
    B, Cin, S = vp_features.shape
    h = jnp.einsum("oc,bcs->bos", params["w1"], vp_features) + params["b1"][None, :, None]
    h = jnp.maximum(h, 0.0)
    y = jnp.einsum("oc,bcs->bos", params["w2"], h) + params["b2"][None, :, None]
    y = y.reshape(B, 2, num_angle, num_depth, S)
    y = jnp.transpose(y, (0, 1, 4, 2, 3))
    return {"grasp_score_pred": y[:, 0], "grasp_width_pred": y[:, 1]}


if __name__ == "__main__":
    num_angle, num_depth = 12, 4
    B, num_seed = 2, 16

    key = jax.random.PRNGKey(0)
    kx, kp = jax.random.split(key)
    vp_features = jax.random.normal(kx, (B, 256, num_seed), jnp.float32)
    params = init_params(kp, num_angle, num_depth)

    ref = _reference(vp_features, params, num_angle, num_depth)

    # 1) f32 path (jitted): tight check against the reference.
    fwd_f32 = jax.jit(functools.partial(
        swad_forward, num_angle=num_angle, num_depth=num_depth, use_bf16=False))
    out_f32 = fwd_f32(vp_features, params)
    jax.block_until_ready(out_f32)
    for name in ("grasp_score_pred", "grasp_width_pred"):
        assert out_f32[name].shape == (B, num_seed, num_angle, num_depth)
        assert jnp.allclose(out_f32[name], ref[name], atol=1e-3, rtol=1e-3)

    # 2) bf16 fast path (default): loose check, shapes must match.
    out_bf16 = swad_forward(vp_features, params, num_angle, num_depth, use_bf16=True)
    jax.block_until_ready(out_bf16)
    for name in ("grasp_score_pred", "grasp_width_pred"):
        assert out_bf16[name].shape == (B, num_seed, num_angle, num_depth)
        assert jnp.allclose(out_bf16[name], ref[name], atol=5e-2, rtol=5e-2)

    # 3) Ragged seed count exercising the padded / tiled grid path.
    S2 = 200
    vp2 = jax.random.normal(jax.random.PRNGKey(1), (B, 256, S2), jnp.float32)
    ref2 = _reference(vp2, params, num_angle, num_depth)
    out2 = swad_forward(vp2, params, num_angle, num_depth, seed_tile=128, use_bf16=False)
    jax.block_until_ready(out2)
    for name in ("grasp_score_pred", "grasp_width_pred"):
        assert out2[name].shape == (B, S2, num_angle, num_depth)
        assert jnp.allclose(out2[name], ref2[name], atol=1e-3, rtol=1e-3)

    print("KERNEL_OK")
</pallas_src>

<mosaic_0001>
module attributes {stable_mosaic.version = 11 : i64} {
  func.func @_swad_kernel(%arg0: i32, %arg1: i32, %arg2: memref<1x256x16xf32, #tpu.memory_space<vmem>>, %arg3: memref<256x256xf32, #tpu.memory_space<vmem>>, %arg4: memref<256x1xf32, #tpu.memory_space<vmem>>, %arg5: memref<96x256xf32, #tpu.memory_space<vmem>>, %arg6: memref<96x1xf32, #tpu.memory_space<vmem>>, %arg7: memref<1x96x16xf32, #tpu.memory_space<vmem>>) attributes {dimension_semantics = [#tpu.dimension_semantics<parallel>, #tpu.dimension_semantics<parallel>], iteration_bounds = array<i64: 2, 1>, scalar_prefetch = 0 : i64, scratch_operands = 0 : i64, tpu.core_type = #tpu.core_type<tc>, window_params = [{transform_indices = @transform_0, window_bounds = array<i64: 1, 256, 16>}, {pipeline_mode = #tpu.pipeline_mode<synchronous>, transform_indices = @transform_1, window_bounds = array<i64: 256, 256>}, {pipeline_mode = #tpu.pipeline_mode<synchronous>, transform_indices = @transform_2, window_bounds = array<i64: 256, 1>}, {pipeline_mode = #tpu.pipeline_mode<synchronous>, transform_indices = @transform_3, window_bounds = array<i64: 96, 256>}, {pipeline_mode = #tpu.pipeline_mode<synchronous>, transform_indices = @transform_4, window_bounds = array<i64: 96, 1>}, {transform_indices = @transform_5, window_bounds = array<i64: 1, 96, 16>}]} {
    %c0 = arith.constant 0 : index
    %c0_0 = arith.constant 0 : index
    %0 = vector.load %arg3[%c0, %c0_0] : memref<256x256xf32, #tpu.memory_space<vmem>>, vector<256x256xf32>
    %c0_1 = arith.constant 0 : index
    %c0_2 = arith.constant 0 : index
    %c0_3 = arith.constant 0 : index
    %1 = vector.load %arg2[%c0_1, %c0_2, %c0_3] : memref<1x256x16xf32, #tpu.memory_space<vmem>>, vector<1x256x16xf32>
    %2 = vector.shape_cast %1 : vector<1x256x16xf32> to vector<256x16xf32>
    %cst = arith.constant dense<0.000000e+00> : vector<256x16xf32>
    %3 = tpu.matmul %0, %2, %cst {dimension_numbers = #tpu.dot_dimension_numbers<[1], [0], [0], [1], [0, 0, 1, 1], [], []>} : vector<256x256xf32>, vector<256x16xf32>, vector<256x16xf32> -> vector<256x16xf32>
    %c0_4 = arith.constant 0 : index
    %c0_5 = arith.constant 0 : index
    %4 = vector.load %arg4[%c0_4, %c0_5] : memref<256x1xf32, #tpu.memory_space<vmem>>, vector<256x1xf32>
    %5 = vector.broadcast %4 : vector<256x1xf32> to vector<256x16xf32>
    %6 = arith.addf %3, %5 : vector<256x16xf32>
    %cst_6 = arith.constant 0.000000e+00 : f32
    %7 = vector.broadcast %cst_6 : f32 to vector<256x16xf32>
    %8 = arith.maximumf %6, %7 : vector<256x16xf32>
    %c0_7 = arith.constant 0 : index
    %c0_8 = arith.constant 0 : index
    %9 = vector.load %arg5[%c0_7, %c0_8] : memref<96x256xf32, #tpu.memory_space<vmem>>, vector<96x256xf32>
    %cst_9 = arith.constant dense<0.000000e+00> : vector<96x16xf32>
    %10 = tpu.matmul %9, %8, %cst_9 {dimension_numbers = #tpu.dot_dimension_numbers<[1], [0], [0], [1], [0, 0, 1, 1], [], []>} : vector<96x256xf32>, vector<256x16xf32>, vector<96x16xf32> -> vector<96x16xf32>
    %c0_10 = arith.constant 0 : index
    %c0_11 = arith.constant 0 : index
    %11 = vector.load %arg6[%c0_10, %c0_11] : memref<96x1xf32, #tpu.memory_space<vmem>>, vector<96x1xf32>
    %12 = vector.broadcast %11 : vector<96x1xf32> to vector<96x16xf32>
    %13 = arith.addf %10, %12 : vector<96x16xf32>
    %c0_12 = arith.constant 0 : index
    %c0_13 = arith.constant 0 : index
    %c0_14 = arith.constant 0 : index
    %14 = vector.load %arg7[%c0_12, %c0_13, %c0_14] : memref<1x96x16xf32, #tpu.memory_space<vmem>>, vector<1x96x16xf32>
    %15 = vector.shape_cast %14 : vector<1x96x16xf32> to vector<96x16xf32>
    %16 = vector.shape_cast %13 : vector<96x16xf32> to vector<1x96x16xf32>
    tpu.vector_store %arg7[%c0_12, %c0_13, %c0_14], %16 {strides = array<i32>} : memref<1x96x16xf32, #tpu.memory_space<vmem>>, vector<1x96x16xf32>,
    return
  }
  func.func @transform_0(%arg0: i32, %arg1: i32) -> (i32, i32, i32) {
    %c0_i32 = arith.constant 0 : i32
    %c0_i32_0 = arith.constant 0 : i32
    return %arg0, %c0_i32, %arg1 : i32, i32, i32
  }
  func.func @transform_1(%arg0: i32, %arg1: i32) -> (i32, i32) {
    %c0_i32 = arith.constant 0 : i32
    %c0_i32_0 = arith.constant 0 : i32
    %c0_i32_1 = arith.constant 0 : i32
    return %c0_i32, %c0_i32_0 : i32, i32
  }
  func.func @transform_2(%arg0: i32, %arg1: i32) -> (i32, i32) {
    %c0_i32 = arith.constant 0 : i32
    %c0_i32_0 = arith.constant 0 : i32
    %c0_i32_1 = arith.constant 0 : i32
    return %c0_i32, %c0_i32_0 : i32, i32
  }
  func.func @transform_3(%arg0: i32, %arg1: i32) -> (i32, i32) {
    %c0_i32 = arith.constant 0 : i32
    %c0_i32_0 = arith.constant 0 : i32
    %c0_i32_1 = arith.constant 0 : i32
    return %c0_i32, %c0_i32_0 : i32, i32
  }
  func.func @transform_4(%arg0: i32, %arg1: i32) -> (i32, i32) {
    %c0_i32 = arith.constant 0 : i32
    %c0_i32_0 = arith.constant 0 : i32
    %c0_i32_1 = arith.constant 0 : i32
    return %c0_i32, %c0_i32_0 : i32, i32
  }
  func.func @transform_5(%arg0: i32, %arg1: i32) -> (i32, i32, i32) {
    %c0_i32 = arith.constant 0 : i32
    %c0_i32_0 = arith.constant 0 : i32
    return %arg0, %c0_i32, %arg1 : i32, i32, i32
  }
}

</mosaic_0001>

<bundles_post_ra>
// kernel: swad_forward.1
= control target key start
LH: loop header
LB: loop body
LE: loop exit
PB: predicated region body
PF: predicated region fallthrough
CT: control target
= control target key end

     0   :  { %s1346_s18 = smov 0   ;;  %s1348_s19 = smov 0   ;;  %s1975_s0 = inlined_call_operand.vmem [shape: f32[2,256,16], index: 0, kind: input, shape index: {}]   ;;  %s1976_s1 = inlined_call_operand.vmem [shape: f32[256,256], index: 1, kind: input, shape index: {}]   ;;  %s1977_s2 = inlined_call_operand.vmem [shape: f32[256,1], index: 2, kind: input, shape index: {}]   ;;  %s1978_s3 = inlined_call_operand.vmem [shape: f32[96,256], index: 3, kind: input, shape index: {}]   ;;  %s1979_s4 = inlined_call_operand.vmem [shape: f32[96,1], index: 4, kind: input, shape index: {}]   ;;  %s1980_s5 = inlined_call_operand.vmem [shape: f32[2,96,16], index: 5, kind: output, shape index: {}]  }
   0x1   :  { %s1350_s20 = smov 0  }
   0x2 LB: > { %s27_s21 = sadd.s32 1, %s1308_s19  ;;  %p1122_p0 = scmp.ge.s32.totalorder %s1312_s20, 1  ;;  %s1312_s20 = sphi %s1350_s20, %s15_s20   ;;  %s1308_s19 = sphi %s1348_s19, %s1982_s19   ;;  %s1304_s18 = sphi %s1346_s18, %s1981_s18  }
   0x3   : > { %p29_p1 = scmp.ge.s32.totalorder %s27_s21, 2  ;;  %p206_p2 = scmp.lt.s32.totalorder %s1312_s20, 3 }
   0x5   : > { %s1984_s21 = smov (%p29_p1, %s27_s21), 0  ;;  %p207_p3 = pnand %p1122_p0, %p206_p2 }
   0x6   : > { %p240_p4 = scmp.lt.s32.totalorder (!%p207_p3), %s1304_s18, 1 }
   0x7   : > { %210 = sbr.rel (%p207_p3) target bundleno = 616 (0x268), region = 40 }
   0xc   : > { %v257_v0 = vld [vmem:[%s1976_s1 + $0x8] sm:$0xff]  ;;  %v1314_v2 = vmov 0.0   ;;  %s1986_s18 = smov (!%p240_p4, %s1304_s18), 1  ;;  %v1315_v3 = vmov 0   ;;  %v382_v4 = vld [vmem:[%s1977_s2 + $0xf0] sm:$0xff]  ;;  %v256_v37 = vld [vmem:[%s1976_s1] sm:$0xff] }
   0xd   : > { %v301_v1 = vld [vmem:[%s1976_s1 + $0x168] sm:$0xff]  ;;  %544 = vmatprep.subr.mxu0 %v1314_v2  ;;  %1197 = vmatprep.subr.mxu1 %v1314_v2  ;;  %s1128_s28 = sshll.u32 %s1986_s18, 8  ;;  %v300_v38 = vld [vmem:[%s1976_s1 + $0x160] sm:$0xff]  ;;  %v259_v39 = vld [vmem:[%s1976_s1 + $0x18] sm:$0xff]  ;;  %s1261_s13 = smul.u32 96, %s1986_s18  ;;  %vm1022_vm0 = vcmask 130048  }
   0xe   : > { %608 = vmatprep.mubr.f32.mxu0 %v257_v0  ;;  %718 = vmatprep.mubr.f32.mxu1 %v301_v1  ;;  %s1381_s6 = scalar_lea.vmem %s1975_s0, %s1128_s28  ;;  %v303_v40 = vld [vmem:[%s1976_s1 + $0x178] sm:$0xff]  ;;  %v366_v41 = vld [vmem:[%s1977_s2 + $0x70] sm:$0xff]  ;;  %v261_v45 = vld [vmem:[%s1976_s1 + $0x28] sm:$0xff] }
   0xf   : > { %1289 = vset.pattern.permute.xlu1 %v1315_v3  ;;  %1288 = vset.pattern.permute.xlu0 %v1315_v3  ;;  %v335_v5 = vld [vmem:[%s1381_s6 + $0x78] sm:$0xff]  ;;  %v334_v6 = vld [vmem:[%s1381_s6 + $0x70] sm:$0xff]  ;;  %v333_v7 = vld [vmem:[%s1381_s6 + $0x68] sm:$0xff]  ;;  %s1940_s16 = scalar_lea.vmem %s1980_s5, %s1261_s13 }
  0x10   : > { %536 = vperm.xlu1 %1289, %v382_v4   ;;  %545 = vmatpush1.msra.mxu0 %v335_v5  ;;  %v332_v8 = vld [vmem:[%s1381_s6 + $0x60] sm:$0xff]  ;;  %v331_v9 = vld [vmem:[%s1381_s6 + $0x58] sm:$0xff]  ;;  %v330_v10 = vld [vmem:[%s1381_s6 + $0x50] sm:$0xff] }
  0x11   : > { %1229 = vmatpush1.msra.mxu1 %v335_v5  ;;  %546 = vmatprep.subr.mxu0 %v1314_v2  ;;  %v329_v11 = vld [vmem:[%s1381_s6 + $0x48] sm:$0xff]  ;;  %v328_v12 = vld [vmem:[%s1381_s6 + $0x40] sm:$0xff]  ;;  %v327_v13 = vld [vmem:[%s1381_s6 + $0x38] sm:$0xff] }
  0x12   : > { %1198 = vmatprep.subr.mxu1 %v1314_v2  ;;  %547 = vmatpush1.msra.mxu0 %v334_v6  ;;  %v326_v14 = vld [vmem:[%s1381_s6 + $0x30] sm:$0xff]  ;;  %v325_v15 = vld [vmem:[%s1381_s6 + $0x28] sm:$0xff]  ;;  %v324_v16 = vld [vmem:[%s1381_s6 + $0x20] sm:$0xff] }
  0x13   : > { %1230 = vmatpush1.msra.mxu1 %v334_v6  ;;  %548 = vmatprep.subr.mxu0 %v1314_v2  ;;  %v323_v17 = vld [vmem:[%s1381_s6 + $0x18] sm:$0xff]  ;;  %v322_v18 = vld [vmem:[%s1381_s6 + $0x10] sm:$0xff]  ;;  %v321_v19 = vld [vmem:[%s1381_s6 + $0x8] sm:$0xff] }
  0x14   : > { %1199 = vmatprep.subr.mxu1 %v1314_v2  ;;  %549 = vmatpush1.msra.mxu0 %v333_v7  ;;  %v320_v20 = vld [vmem:[%s1381_s6] sm:$0xff]  ;;  %v351_v21 = vld [vmem:[%s1381_s6 + $0xf8] sm:$0xff]  ;;  %v350_v22 = vld [vmem:[%s1381_s6 + $0xf0] sm:$0xff] }
  0x15   : > { %1231 = vmatpush1.msra.mxu1 %v333_v7  ;;  %550 = vmatprep.subr.mxu0 %v1314_v2  ;;  %v349_v23 = vld [vmem:[%s1381_s6 + $0xe8] sm:$0xff]  ;;  %v348_v24 = vld [vmem:[%s1381_s6 + $0xe0] sm:$0xff]  ;;  %v347_v25 = vld [vmem:[%s1381_s6 + $0xd8] sm:$0xff] }
  0x16   : > { %1200 = vmatprep.subr.mxu1 %v1314_v2  ;;  %551 = vmatpush1.msra.mxu0 %v332_v8  ;;  %v346_v26 = vld [vmem:[%s1381_s6 + $0xd0] sm:$0xff]  ;;  %v345_v27 = vld [vmem:[%s1381_s6 + $0xc8] sm:$0xff]  ;;  %v344_v28 = vld [vmem:[%s1381_s6 + $0xc0] sm:$0xff] }
  0x17   : > { %1232 = vmatpush1.msra.mxu1 %v332_v8  ;;  %552 = vmatprep.subr.mxu0 %v1314_v2  ;;  %v343_v29 = vld [vmem:[%s1381_s6 + $0xb8] sm:$0xff]  ;;  %v342_v30 = vld [vmem:[%s1381_s6 + $0xb0] sm:$0xff]  ;;  %v341_v31 = vld [vmem:[%s1381_s6 + $0xa8] sm:$0xff] }
  0x18   : > { %1201 = vmatprep.subr.mxu1 %v1314_v2  ;;  %553 = vmatpush1.msra.mxu0 %v331_v9  ;;  %v340_v32 = vld [vmem:[%s1381_s6 + $0xa0] sm:$0xff]  ;;  %v339_v33 = vld [vmem:[%s1381_s6 + $0x98] sm:$0xff]  ;;  %v338_v34 = vld [vmem:[%s1381_s6 + $0x90] sm:$0xff] }
  0x19   : > { %1233 = vmatpush1.msra.mxu1 %v331_v9  ;;  %554 = vmatprep.subr.mxu0 %v1314_v2  ;;  %v337_v35 = vld [vmem:[%s1381_s6 + $0x88] sm:$0xff]  ;;  %v336_v36 = vld [vmem:[%s1381_s6 + $0x80] sm:$0xff]  ;;  %v383_v42 = vld [vmem:[%s1977_s2 + $0xf8] sm:$0xff] }
  0x1a   : > { %1202 = vmatprep.subr.mxu1 %v1314_v2  ;;  %555 = vmatpush1.msra.mxu0 %v330_v10  ;;  %v258_v43 = vld [vmem:[%s1976_s1 + $0x10] sm:$0xff]  ;;  %v305_v46 = vld [vmem:[%s1976_s1 + $0x188] sm:$0xff]  ;;  %v367_v48 = vld [vmem:[%s1977_s2 + $0x78] sm:$0xff] }
  0x1b   : > { %1234 = vmatpush1.msra.mxu1 %v330_v10  ;;  %556 = vmatprep.subr.mxu0 %v1314_v2  ;;  %v302_v44 = vld [vmem:[%s1976_s1 + $0x170] sm:$0xff]  ;;  %v365_v47 = vld [vmem:[%s1977_s2 + $0x68] sm:$0xff]  ;;  %v260_v49 = vld [vmem:[%s1976_s1 + $0x20] sm:$0xff] }
  0x1c   : > { %1203 = vmatprep.subr.mxu1 %v1314_v2  ;;  %557 = vmatpush1.msra.mxu0 %v329_v11  ;;  %v304_v50 = vld [vmem:[%s1976_s1 + $0x180] sm:$0xff]  ;;  %v263_v51 = vld [vmem:[%s1976_s1 + $0x38] sm:$0xff]  ;;  %v381_v54 = vld [vmem:[%s1977_s2 + $0xe8] sm:$0xff] }
  0x1d   : > { %1235 = vmatpush1.msra.mxu1 %v329_v11  ;;  %558 = vmatprep.subr.mxu0 %v1314_v2  ;;  %v307_v52 = vld [vmem:[%s1976_s1 + $0x198] sm:$0xff]  ;;  %v364_v53 = vld [vmem:[%s1977_s2 + $0x60] sm:$0xff]  ;;  %v262_v55 = vld [vmem:[%s1976_s1 + $0x30] sm:$0xff] }
  0x1e   : > { %1204 = vmatprep.subr.mxu1 %v1314_v2  ;;  %559 = vmatpush1.msra.mxu0 %v328_v12  ;;  %v306_v56 = vld [vmem:[%s1976_s1 + $0x190] sm:$0xff]  ;;  %v265_v57 = vld [vmem:[%s1976_s1 + $0x48] sm:$0xff]  ;;  %v363_v59 = vld [vmem:[%s1977_s2 + $0x58] sm:$0xff] }
  0x1f   : > { %1236 = vmatpush1.msra.mxu1 %v328_v12  ;;  %560 = vmatprep.subr.mxu0 %v1314_v2  ;;  %v309_v58 = vld [vmem:[%s1976_s1 + $0x1a8] sm:$0xff]  ;;  %v380_v60 = vld [vmem:[%s1977_s2 + $0xe0] sm:$0xff]  ;;  %v267_v63 = vld [vmem:[%s1976_s1 + $0x58] sm:$0xff] }
  0x20   : > { %1205 = vmatprep.subr.mxu1 %v1314_v2  ;;  %561 = vmatpush1.msra.mxu0 %v327_v13  ;;  %v264_v61 = vld [vmem:[%s1976_s1 + $0x40] sm:$0xff]  ;;  %v311_v0 = vld [vmem:[%s1976_s1 + $0x1b8] sm:$0xff]  ;;  %v362_v1 = vld [vmem:[%s1977_s2 + $0x50] sm:$0xff] }
  0x21   : > { %1237 = vmatpush1.msra.mxu1 %v327_v13  ;;  %562 = vmatprep.subr.mxu0 %v1314_v2  ;;  %v308_v62 = vld [vmem:[%s1976_s1 + $0x1a0] sm:$0xff]  ;;  %v266_v3 = vld [vmem:[%s1976_s1 + $0x50] sm:$0xff]  ;;  %v269_v5 = vld [vmem:[%s1976_s1 + $0x68] sm:$0xff] }
  0x22   : > { %1206 = vmatprep.subr.mxu1 %v1314_v2  ;;  %563 = vmatpush1.msra.mxu0 %v326_v14  ;;  %v310_v4 = vld [vmem:[%s1976_s1 + $0x1b0] sm:$0xff]  ;;  %v313_v6 = vld [vmem:[%s1976_s1 + $0x1c8] sm:$0xff]  ;;  %v268_v9 = vld [vmem:[%s1976_s1 + $0x60] sm:$0xff] }
  0x23   : > { %1238 = vmatpush1.msra.mxu1 %v326_v14  ;;  %564 = vmatprep.subr.mxu0 %v1314_v2  ;;  %v361_v7 = vld [vmem:[%s1977_s2 + $0x48] sm:$0xff]  ;;  %v378_v8 = vld [vmem:[%s1977_s2 + $0xd0] sm:$0xff]  ;;  %v312_v10 = vld [vmem:[%s1976_s1 + $0x1c0] sm:$0xff] }
  0x24   : > { %1207 = vmatprep.subr.mxu1 %v1314_v2  ;;  %565 = vmatpush1.msra.mxu0 %v325_v15  ;;  %v271_v11 = vld [vmem:[%s1976_s1 + $0x78] sm:$0xff]  ;;  %v360_v13 = vld [vmem:[%s1977_s2 + $0x40] sm:$0xff]  ;;  %v377_v14 = vld [vmem:[%s1977_s2 + $0xc8] sm:$0xff] }
  0x25   : > { %1239 = vmatpush1.msra.mxu1 %v325_v15  ;;  %566 = vmatprep.subr.mxu0 %v1314_v2  ;;  %v315_v12 = vld [vmem:[%s1976_s1 + $0x1d8] sm:$0xff]  ;;  %v270_v15 = vld [vmem:[%s1976_s1 + $0x70] sm:$0xff] }
  0x26   : > { %1208 = vmatprep.subr.mxu1 %v1314_v2  ;;  %567 = vmatpush1.msra.mxu0 %v324_v16 }
  0x27   : > { %1240 = vmatpush1.msra.mxu1 %v324_v16  ;;  %568 = vmatprep.subr.mxu0 %v1314_v2  ;;  %v314_v16 = vld [vmem:[%s1976_s1 + $0x1d0] sm:$0xff] }
  0x28   : > { %1209 = vmatprep.subr.mxu1 %v1314_v2  ;;  %569 = vmatpush1.msra.mxu0 %v323_v17 }
  0x29   : > { %1241 = vmatpush1.msra.mxu1 %v323_v17  ;;  %570 = vmatprep.subr.mxu0 %v1314_v2  ;;  %v273_v17 = vld [vmem:[%s1976_s1 + $0x88] sm:$0xff] }
  0x2a   : > { %1210 = vmatprep.subr.mxu1 %v1314_v2  ;;  %571 = vmatpush1.msra.mxu0 %v322_v18 }
  0x2b   : > { %1242 = vmatpush1.msra.mxu1 %v322_v18  ;;  %572 = vmatprep.subr.mxu0 %v1314_v2  ;;  %v317_v18 = vld [vmem:[%s1976_s1 + $0x1e8] sm:$0xff] }
  0x2c   : > { %1211 = vmatprep.subr.mxu1 %v1314_v2  ;;  %573 = vmatpush1.msra.mxu0 %v321_v19 }
  0x2d   : > { %1243 = vmatpush1.msra.mxu1 %v321_v19  ;;  %574 = vmatprep.subr.mxu0 %v1314_v2  ;;  %v359_v19 = vld [vmem:[%s1977_s2 + $0x38] sm:$0xff] }
  0x2e   : > { %1212 = vmatprep.subr.mxu1 %v1314_v2  ;;  %575 = vmatpush1.msra.mxu0 %v320_v20 }
  0x2f   : > { %1244 = vmatpush1.msra.mxu1 %v320_v20  ;;  %576 = vmatprep.subr.mxu0 %v1314_v2  ;;  %v376_v20 = vld [vmem:[%s1977_s2 + $0xc0] sm:$0xff] }
  0x30   : > { %1213 = vmatprep.subr.mxu1 %v1314_v2  ;;  %577 = vmatpush2.msra.mxu0 %v351_v21 }
  0x31   : > { %1245 = vmatpush2.msra.mxu1 %v351_v21  ;;  %578 = vmatprep.subr.mxu0 %v1314_v2  ;;  %v272_v21 = vld [vmem:[%s1976_s1 + $0x80] sm:$0xff] }
  0x32   : > { %1214 = vmatprep.subr.mxu1 %v1314_v2  ;;  %579 = vmatpush2.msra.mxu0 %v350_v22 }
  0x33   : > { %1246 = vmatpush2.msra.mxu1 %v350_v22  ;;  %580 = vmatprep.subr.mxu0 %v1314_v2  ;;  %v316_v22 = vld [vmem:[%s1976_s1 + $0x1e0] sm:$0xff] }
  0x34   : > { %1215 = vmatprep.subr.mxu1 %v1314_v2  ;;  %581 = vmatpush2.msra.mxu0 %v349_v23 }
  0x35   : > { %1247 = vmatpush2.msra.mxu1 %v349_v23  ;;  %582 = vmatprep.subr.mxu0 %v1314_v2  ;;  %v275_v23 = vld [vmem:[%s1976_s1 + $0x98] sm:$0xff] }
  0x36   : > { %1216 = vmatprep.subr.mxu1 %v1314_v2  ;;  %583 = vmatpush2.msra.mxu0 %v348_v24 }
  0x37   : > { %1248 = vmatpush2.msra.mxu1 %v348_v24  ;;  %584 = vmatprep.subr.mxu0 %v1314_v2  ;;  %v319_v24 = vld [vmem:[%s1976_s1 + $0x1f8] sm:$0xff] }
  0x38   : > { %1217 = vmatprep.subr.mxu1 %v1314_v2  ;;  %585 = vmatpush2.msra.mxu0 %v347_v25 }
  0x39   : > { %1249 = vmatpush2.msra.mxu1 %v347_v25  ;;  %586 = vmatprep.subr.mxu0 %v1314_v2  ;;  %v358_v25 = vld [vmem:[%s1977_s2 + $0x30] sm:$0xff] }
  0x3a   : > { %1218 = vmatprep.subr.mxu1 %v1314_v2  ;;  %587 = vmatpush2.msra.mxu0 %v346_v26 }
  0x3b   : > { %1250 = vmatpush2.msra.mxu1 %v346_v26  ;;  %588 = vmatprep.subr.mxu0 %v1314_v2  ;;  %v375_v26 = vld [vmem:[%s1977_s2 + $0xb8] sm:$0xff] }
  0x3c   : > { %1219 = vmatprep.subr.mxu1 %v1314_v2  ;;  %589 = vmatpush2.msra.mxu0 %v345_v27 }
  0x3d   : > { %1251 = vmatpush2.msra.mxu1 %v345_v27  ;;  %590 = vmatprep.subr.mxu0 %v1314_v2  ;;  %v274_v27 = vld [vmem:[%s1976_s1 + $0x90] sm:$0xff] }
  0x3e   : > { %1220 = vmatprep.subr.mxu1 %v1314_v2  ;;  %591 = vmatpush2.msra.mxu0 %v344_v28 }
  0x3f   : > { %1252 = vmatpush2.msra.mxu1 %v344_v28  ;;  %592 = vmatprep.subr.mxu0 %v1314_v2  ;;  %v318_v28 = vld [vmem:[%s1976_s1 + $0x1f0] sm:$0xff] }
  0x40   : > { %1221 = vmatprep.subr.mxu1 %v1314_v2  ;;  %593 = vmatpush2.msra.mxu0 %v343_v29 }
  0x41   : > { %1253 = vmatpush2.msra.mxu1 %v343_v29  ;;  %594 = vmatprep.subr.mxu0 %v1314_v2  ;;  %v277_v29 = vld [vmem:[%s1976_s1 + $0xa8] sm:$0xff] }
  0x42   : > { %1222 = vmatprep.subr.mxu1 %v1314_v2  ;;  %595 = vmatpush2.msra.mxu0 %v342_v30 }
  0x43   : > { %1254 = vmatpush2.msra.mxu1 %v342_v30  ;;  %596 = vmatprep.subr.mxu0 %v1314_v2  ;;  %v357_v30 = vld [vmem:[%s1977_s2 + $0x28] sm:$0xff] }
  0x44   : > { %1223 = vmatprep.subr.mxu1 %v1314_v2  ;;  %597 = vmatpush2.msra.mxu0 %v341_v31 }
  0x45   : > { %1255 = vmatpush2.msra.mxu1 %v341_v31  ;;  %598 = vmatprep.subr.mxu0 %v1314_v2  ;;  %v374_v31 = vld [vmem:[%s1977_s2 + $0xb0] sm:$0xff] }
  0x46   : > { %1224 = vmatprep.subr.mxu1 %v1314_v2  ;;  %599 = vmatpush2.msra.mxu0 %v340_v32 }
  0x47   : > { %1256 = vmatpush2.msra.mxu1 %v340_v32  ;;  %600 = vmatprep.subr.mxu0 %v1314_v2  ;;  %v276_v32 = vld [vmem:[%s1976_s1 + $0xa0] sm:$0xff] }
  0x48   : > { %1225 = vmatprep.subr.mxu1 %v1314_v2  ;;  %601 = vmatpush2.msra.mxu0 %v339_v33 }
  0x49   : > { %1257 = vmatpush2.msra.mxu1 %v339_v33  ;;  %602 = vmatprep.subr.mxu0 %v1314_v2  ;;  %v279_v33 = vld [vmem:[%s1976_s1 + $0xb8] sm:$0xff] }
  0x4a   : > { %1226 = vmatprep.subr.mxu1 %v1314_v2  ;;  %603 = vmatpush2.msra.mxu0 %v338_v34 }
  0x4b   : > { %1258 = vmatpush2.msra.mxu1 %v338_v34  ;;  %604 = vmatprep.subr.mxu0 %v1314_v2  ;;  %v356_v34 = vld [vmem:[%s1977_s2 + $0x20] sm:$0xff] }
  0x4c   : > { %1227 = vmatprep.subr.mxu1 %v1314_v2  ;;  %605 = vmatpush2.msra.mxu0 %v337_v35 }
  0x4d   : > { %1259 = vmatpush2.msra.mxu1 %v337_v35  ;;  %606 = vmatprep.subr.mxu0 %v1314_v2  ;;  %v373_v35 = vld [vmem:[%s1977_s2 + $0xa8] sm:$0xff] }
  0x4e   : > { %1228 = vmatprep.subr.mxu1 %v1314_v2  ;;  %607 = vmatpush2.msra.mxu0 %v336_v36  ;;  %v379_v2 = vld [vmem:[%s1977_s2 + $0xd8] sm:$0xff] }
  0x4f   : > { %1260 = vmatpush2.msra.mxu1 %v336_v36  ;;  %609 = vmatmul.mubr.f32.vlgmr.msra.gmra.mxu0 %v256_v37  ;;  %v278_v36 = vld [vmem:[%s1976_s1 + $0xb0] sm:$0xff]  ;;  %v281_v37 = vld [vmem:[%s1976_s1 + $0xc8] sm:$0xff] }
  0x50   : > { %719 = vmatmul.mubr.f32.vlgmr.msra.gmra.mxu1 %v300_v38  ;;  %613 = vmatprep.mubr.f32.mxu0 %v259_v39  ;;  %v355_v38 = vld [vmem:[%s1977_s2 + $0x18] sm:$0xff]  ;;  %v372_v39 = vld [vmem:[%s1977_s2 + $0xa0] sm:$0xff] }
  0x51   : > { %723 = vmatprep.mubr.f32.mxu1 %v303_v40  ;;  %456 = vperm.xlu1 %1289, %v366_v41   ;;  %v280_v40 = vld [vmem:[%s1976_s1 + $0xc0] sm:$0xff]  ;;  %v283_v41 = vld [vmem:[%s1976_s1 + $0xd8] sm:$0xff] }
  0x52   : > { %541 = vperm.xlu0 %1288, %v383_v42   ;;  %v354_v42 = vld [vmem:[%s1977_s2 + $0x10] sm:$0xff] }
  0x53   : > { %614 = vmatmul.mubr.f32.gmra.mxu0 %v258_v43  ;;  %v371_v43 = vld [vmem:[%s1977_s2 + $0x98] sm:$0xff] }
  0x54   : > { %724 = vmatmul.mubr.f32.gmra.mxu1 %v302_v44  ;;  %618 = vmatprep.mubr.f32.mxu0 %v261_v45  ;;  %v282_v44 = vld [vmem:[%s1976_s1 + $0xd0] sm:$0xff]  ;;  %v285_v45 = vld [vmem:[%s1976_s1 + $0xe8] sm:$0xff] }
  0x55   : > { %728 = vmatprep.mubr.f32.mxu1 %v305_v46  ;;  %451 = vperm.xlu1 %1289, %v365_v47   ;;  %v353_v46 = vld [vmem:[%s1977_s2 + $0x8] sm:$0xff]  ;;  %v370_v47 = vld [vmem:[%s1977_s2 + $0x90] sm:$0xff] }
  0x56   : > { %461 = vperm.xlu0 %1288, %v367_v48   ;;  %v284_v48 = vld [vmem:[%s1976_s1 + $0xe0] sm:$0xff] }
  0x57   : > { %619 = vmatmul.mubr.f32.gmra.mxu0 %v260_v49  ;;  %v287_v49 = vld [vmem:[%s1976_s1 + $0xf8] sm:$0xff] }
  0x58   : > { %729 = vmatmul.mubr.f32.gmra.mxu1 %v304_v50  ;;  %623 = vmatprep.mubr.f32.mxu0 %v263_v51  ;;  %v352_v50 = vld [vmem:[%s1977_s2] sm:$0xff]  ;;  %v369_v51 = vld [vmem:[%s1977_s2 + $0x88] sm:$0xff] }
  0x59   : > { %733 = vmatprep.mubr.f32.mxu1 %v307_v52  ;;  %446 = vperm.xlu1 %1289, %v364_v53   ;;  %v286_v52 = vld [vmem:[%s1976_s1 + $0xf0] sm:$0xff]  ;;  %v289_v53 = vld [vmem:[%s1976_s1 + $0x108] sm:$0xff] }
  0x5a   : > { %531 = vperm.xlu0 %1288, %v381_v54   ;;  %v368_v54 = vld [vmem:[%s1977_s2 + $0x80] sm:$0xff] }
  0x5b   : > { %624 = vmatmul.mubr.f32.gmra.mxu0 %v262_v55  ;;  %v826_v55 = vld [vmem:[%s1979_s4 + $0x8] sm:$0xff] }
  0x5c   : > { %734 = vmatmul.mubr.f32.gmra.mxu1 %v306_v56  ;;  %628 = vmatprep.mubr.f32.mxu0 %v265_v57  ;;  %v288_v56 = vld [vmem:[%s1976_s1 + $0x100] sm:$0xff]  ;;  %v291_v57 = vld [vmem:[%s1976_s1 + $0x118] sm:$0xff] }
  0x5d   : > { %738 = vmatprep.mubr.f32.mxu1 %v309_v58  ;;  %441 = vperm.xlu1 %1289, %v363_v59   ;;  %v825_v58 = vld [vmem:[%s1979_s4] sm:$0xff]  ;;  %v828_v59 = vld [vmem:[%s1979_s4 + $0x18] sm:$0xff] }
  0x5e   : > { %526 = vperm.xlu0 %1288, %v380_v60   ;;  %v290_v60 = vld [vmem:[%s1976_s1 + $0x110] sm:$0xff] }
  0x5f   : > { %629 = vmatmul.mubr.f32.gmra.mxu0 %v264_v61  ;;  %v293_v61 = vld [vmem:[%s1976_s1 + $0x128] sm:$0xff] }
  0x60   : > { %739 = vmatmul.mubr.f32.gmra.mxu1 %v308_v62  ;;  %633 = vmatprep.mubr.f32.mxu0 %v267_v63  ;;  %v827_v62 = vld [vmem:[%s1979_s4 + $0x10] sm:$0xff]  ;;  %v830_v63 = vld [vmem:[%s1979_s4 + $0x28] sm:$0xff] }
  0x61   : > { %743 = vmatprep.mubr.f32.mxu1 %v311_v0  ;;  %436 = vperm.xlu1 %1289, %v362_v1   ;;  %v292_v0 = vld [vmem:[%s1976_s1 + $0x120] sm:$0xff]  ;;  %v295_v1 = vld [vmem:[%s1976_s1 + $0x138] sm:$0xff] }
  0x62   : > { %521 = vperm.xlu0 %1288, %v379_v2   ;;  %v829_v2 = vld [vmem:[%s1979_s4 + $0x20] sm:$0xff] }
  0x63   : > { %634 = vmatmul.mubr.f32.gmra.mxu0 %v266_v3  ;;  %v832_v3 = vld [vmem:[%s1979_s4 + $0x38] sm:$0xff] }
  0x64   : > { %744 = vmatmul.mubr.f32.gmra.mxu1 %v310_v4  ;;  %638 = vmatprep.mubr.f32.mxu0 %v269_v5  ;;  %v294_v4 = vld [vmem:[%s1976_s1 + $0x130] sm:$0xff]  ;;  %v297_v5 = vld [vmem:[%s1976_s1 + $0x148] sm:$0xff] }
  0x65   : > { %748 = vmatprep.mubr.f32.mxu1 %v313_v6  ;;  %431 = vperm.xlu1 %1289, %v361_v7   ;;  %v831_v6 = vld [vmem:[%s1979_s4 + $0x30] sm:$0xff]  ;;  %v834_v7 = vld [vmem:[%s1979_s4 + $0x48] sm:$0xff] }
  0x66   : > { %516 = vperm.xlu0 %1288, %v378_v8   ;;  %v296_v8 = vld [vmem:[%s1976_s1 + $0x140] sm:$0xff] }
  0x67   : > { %639 = vmatmul.mubr.f32.gmra.mxu0 %v268_v9  ;;  %v299_v9 = vld [vmem:[%s1976_s1 + $0x158] sm:$0xff] }
  0x68   : > { %749 = vmatmul.mubr.f32.gmra.mxu1 %v312_v10  ;;  %643 = vmatprep.mubr.f32.mxu0 %v271_v11  ;;  %v833_v10 = vld [vmem:[%s1979_s4 + $0x40] sm:$0xff]  ;;  %v836_v11 = vld [vmem:[%s1979_s4 + $0x58] sm:$0xff] }
  0x69   : > { %753 = vmatprep.mubr.f32.mxu1 %v315_v12  ;;  %426 = vperm.xlu1 %1289, %v360_v13   ;;  %v298_v12 = vld [vmem:[%s1976_s1 + $0x150] sm:$0xff] }
  0x6a   : > { %511 = vperm.xlu0 %1288, %v377_v14   ;;  %v835_v13 = vld [vmem:[%s1979_s4 + $0x50] sm:$0xff]  ;;  %v802_v14 = vld [vmem:[%s1978_s3 + $0x8] sm:$0xff] }
  0x6b   : > { %644 = vmatmul.mubr.f32.gmra.mxu0 %v270_v15 }
  0x6c   : > { %754 = vmatmul.mubr.f32.gmra.mxu1 %v314_v16  ;;  %648 = vmatprep.mubr.f32.mxu0 %v273_v17 }
  0x6d   : > { %758 = vmatprep.mubr.f32.mxu1 %v317_v18  ;;  %421 = vperm.xlu1 %1289, %v359_v19  }
  0x6e   : > { %506 = vperm.xlu0 %1288, %v376_v20  }
  0x6f   : > { %649 = vmatmul.mubr.f32.gmra.mxu0 %v272_v21 }
  0x70   : > { %759 = vmatmul.mubr.f32.gmra.mxu1 %v316_v22  ;;  %653 = vmatprep.mubr.f32.mxu0 %v275_v23 }
  0x71   : > { %763 = vmatprep.mubr.f32.mxu1 %v319_v24  ;;  %416 = vperm.xlu1 %1289, %v358_v25  }
  0x72   : > { %501 = vperm.xlu0 %1288, %v375_v26  }
  0x73   : > { %654 = vmatmul.mubr.f32.gmra.mxu0 %v274_v27 }
  0x74   : > { %764 = vmatmul.mubr.f32.gmra.mxu1 %v318_v28  ;;  %658 = vmatprep.mubr.f32.mxu0 %v277_v29 }
  0x75   : > { %411 = vperm.xlu1 %1289, %v357_v30   ;;  %961 = vmatprep.mubr.f32.mxu1 %v802_v14 }
  0x76   : > { %496 = vperm.xlu0 %1288, %v374_v31  }
  0x77   : > { %659 = vmatmul.mubr.f32.gmra.mxu0 %v276_v32 }
  0x78   : > { %663 = vmatprep.mubr.f32.mxu0 %v279_v33 }
  0x79   : > { %406 = vperm.xlu1 %1289, %v356_v34  }
  0x7a   : > { %491 = vperm.xlu0 %1288, %v373_v35  }
  0x7b   : > { %664 = vmatmul.mubr.f32.gmra.mxu0 %v278_v36 }
  0x7c   : > { %668 = vmatprep.mubr.f32.mxu0 %v281_v37 }
  0x7d   : > { %401 = vperm.xlu1 %1289, %v355_v38  }
  0x7e   : > { %486 = vperm.xlu0 %1288, %v372_v39  }
  0x7f   : > { %669 = vmatmul.mubr.f32.gmra.mxu0 %v280_v40 }
  0x80   : > { %673 = vmatprep.mubr.f32.mxu0 %v283_v41 }
  0x81   : > { %396 = vperm.xlu1 %1289, %v354_v42  }
  0x82   : > { %481 = vperm.xlu0 %1288, %v371_v43  }
  0x83   : > { %674 = vmatmul.mubr.f32.gmra.mxu0 %v282_v44 }
  0x84   : > { %678 = vmatprep.mubr.f32.mxu0 %v285_v45 }
  0x85   : > { %391 = vperm.xlu1 %1289, %v353_v46  }
  0x86   : > { %476 = vperm.xlu0 %1288, %v370_v47  }
  0x87   : > { %679 = vmatmul.mubr.f32.gmra.mxu0 %v284_v48 }
  0x88   : > { %683 = vmatprep.mubr.f32.mxu0 %v287_v49 }
  0x89   : > { %386 = vperm.xlu1 %1289, %v352_v50  }
  0x8a   : > { %471 = vperm.xlu0 %1288, %v369_v51  }
  0x8b   : > { %684 = vmatmul.mubr.f32.gmra.mxu0 %v286_v52  ;;  %v1799_v17 = vpop.permute.xlu1 %536 }
  0x8c   : > { %688 = vmatprep.mubr.f32.mxu0 %v289_v53 }
  0x8d   : > { %844 = vperm.xlu1 %1289, %v826_v55  }
  0x8e   : > { %466 = vperm.xlu0 %1288, %v368_v54  }
  0x8f   : > { %689 = vmatmul.mubr.f32.gmra.mxu0 %v288_v56 }
  0x90   : > { %693 = vmatprep.mubr.f32.mxu0 %v291_v57 }
  0x91   : > { %854 = vperm.xlu1 %1289, %v828_v59  }
  0x92   : > { %839 = vperm.xlu0 %1288, %v825_v58  }
  0x93   : > { %694 = vmatmul.mubr.f32.gmra.mxu0 %v290_v60 }
  0x94   : > { %698 = vmatprep.mubr.f32.mxu0 %v293_v61 }
  0x95   : > { %864 = vperm.xlu1 %1289, %v830_v63  }
  0x96   : > { %849 = vperm.xlu0 %1288, %v827_v62  }
  0x97   : > { %699 = vmatmul.mubr.f32.gmra.mxu0 %v292_v0 }
  0x98   : > { %703 = vmatprep.mubr.f32.mxu0 %v295_v1 }
  0x99   : > { %874 = vperm.xlu1 %1289, %v832_v3  }
  0x9a   : > { %859 = vperm.xlu0 %1288, %v829_v2  }
  0x9b   : > { %704 = vmatmul.mubr.f32.gmra.mxu0 %v294_v4 }
  0x9c   : > { %708 = vmatprep.mubr.f32.mxu0 %v297_v5 }
  0x9d   : > { %884 = vperm.xlu1 %1289, %v834_v7  }
  0x9e   : > { %869 = vperm.xlu0 %1288, %v831_v6  }
  0x9f   : > { %709 = vmatmul.mubr.f32.gmra.mxu0 %v296_v8 }
  0xa0   : > { %713 = vmatprep.mubr.f32.mxu0 %v299_v9 }
  0xa1   : > { %894 = vperm.xlu1 %1289, %v836_v11  }
  0xa2   : > { %879 = vperm.xlu0 %1288, %v833_v10  }
  0xa3   : > { %714 = vmatmul.mubr.f32.gmra.mxu0 %v298_v12 }
  0xa6   : > { %889 = vperm.xlu0 %1288, %v835_v13  }
  0xcc   : > { %v1805_v25 = vpop.permute.xlu1 %456 }
  0xcd   : > { %v542_v18 = vpop.permute.xlu0 %541 }
  0xd0   : > { %v1817_v33 = vpop.permute.xlu1 %451 }
  0xd1   : > { %v1807_v26 = vpop.permute.xlu0 %461 }
  0xd4   : > { %v447_v41 = vpop.permute.xlu1 %446 }
  0xd5   : > { %v532_v34 = vpop.permute.xlu0 %531 }
  0xd8   : > { %v442_v49 = vpop.permute.xlu1 %441 }
  0xd9   : > { %v527_v42 = vpop.permute.xlu0 %526 }
  0xdc   : > { %v437_v57 = vpop.permute.xlu1 %436 }
  0xdd   : > { %v522_v50 = vpop.permute.xlu0 %521 }
  0xe0   : > { %v432_v1 = vpop.permute.xlu1 %431 }
  0xe1   : > { %v517_v58 = vpop.permute.xlu0 %516 }
  0xe4   : > { %v427_v9 = vpop.permute.xlu1 %426 }
  0xe5   : > { %v512_v2 = vpop.permute.xlu0 %511 }
  0xe8   : > { %v422_v14 = vpop.permute.xlu1 %421 }
  0xe9   : > { %v507_v10 = vpop.permute.xlu0 %506 }
 0x10f   : > { %v1795_v15 = vpop.f32.mrf.mxu0 }
 0x110   : > { %v1797_v16 = vpop.f32.mrf.mxu1 }
 0x111   : > { %v612_v19 = vpop.f32.mrf.mxu0 }
 0x112   : > { %v722_v20 = vpop.f32.mrf.mxu1  ;;  %v502_v19 = vpop.permute.xlu0 %501 }
 0x113   : > { %v1801_v21 = vpop.f32.mrf.mxu0 }
 0x114   : > { %v1803_v22 = vpop.f32.mrf.mxu1 }
 0x115   : > { %v617_v23 = vpop.f32.mrf.mxu0 }
 0x116   : > { %v727_v24 = vpop.f32.mrf.mxu1 }
 0x117   : > { %v1809_v27 = vpop.f32.mrf.mxu0 }
 0x118   : > { %v1811_v28 = vpop.f32.mrf.mxu1 }
 0x119   : > { %v622_v29 = vpop.f32.mrf.mxu0 }
 0x11a   : > { %v732_v30 = vpop.f32.mrf.mxu1  ;;  %v1831_v29 = vpop.permute.xlu1 %416 }
 0x11b   : > { %v1813_v31 = vpop.f32.mrf.mxu0  ;;  %v497_v30 = vpop.permute.xlu0 %496 }
 0x11c   : > { %v1815_v32 = vpop.f32.mrf.mxu1 }
 0x11d   : > { %v627_v35 = vpop.f32.mrf.mxu0 }
 0x11e   : > { %v737_v36 = vpop.f32.mrf.mxu1 }
 0x11f   : > { %v1819_v37 = vpop.f32.mrf.mxu0 }
 0x120   : > { %v1821_v38 = vpop.f32.mrf.mxu1 }
 0x121   : > { %v632_v39 = vpop.f32.mrf.mxu0 }
 0x122   : > { %v742_v40 = vpop.f32.mrf.mxu1 }
 0x123   : > { %v1823_v43 = vpop.f32.mrf.mxu0  ;;  %v1834_v40 = vpop.permute.xlu1 %411 }
 0x124   : > { %v745_v44 = vpop.f32.mrf.mxu1 }
 0x125   : > { %v637_v45 = vpop.f32.mrf.mxu0 }
 0x126   : > { %v747_v46 = vpop.f32.mrf.mxu1 }
 0x127   : > { %v1825_v47 = vpop.f32.mrf.mxu0 }
 0x128   : > { %v750_v48 = vpop.f32.mrf.mxu1 }
 0x129   : > { %v642_v51 = vpop.f32.mrf.mxu0 }
 0x12a   : > { %v752_v52 = vpop.f32.mrf.mxu1  ;;  %v1838_v51 = vpop.permute.xlu0 %491 }
 0x12b   : > { %v1827_v53 = vpop.f32.mrf.mxu0 }
 0x12c   : > { %v755_v54 = vpop.f32.mrf.mxu1 }
 0x12d   : > { %v647_v55 = vpop.f32.mrf.mxu0  ;;  %v756_v52 = vadd.f32 %v755_v54, %v532_v34 }
 0x12e   : > { %v757_v56 = vpop.f32.mrf.mxu1  ;;  %v487_v34 = vpop.permute.xlu0 %486 }
 0x12f   : > { %v1829_v59 = vpop.f32.mrf.mxu0 }
 0x130   : > { %v760_v60 = vpop.f32.mrf.mxu1 }
 0x131   : > { %v652_v61 = vpop.f32.mrf.mxu0  ;;  %v761_v36 = vadd.f32 %v760_v60, %v1799_v17  ;;  %v746_v60 = vadd.f32 %v745_v44, %v522_v50  ;;  %v736_v44 = vadd.f32 %v1815_v32, %v512_v2 }
 0x132   : > { %v762_v62 = vpop.f32.mrf.mxu1 }
 0x133   : > { %v655_v63 = vpop.f32.mrf.mxu0  ;;  %v751_v62 = vadd.f32 %v750_v48, %v527_v42  ;;  %v796_v50 = vmax.f32 %v746_v60, 0.0  ;;  %v794_v32 = vmax.f32 %v736_v44, 0.0  ;;  %v806_v44 = vld [vmem:[%s1978_s3 + $0x28] sm:$0xff] }
 0x134   : > { %v765_v0 = vpop.f32.mrf.mxu1 }
 0x135   : > { %v766_v3 = vadd.f32 %v765_v0, %v542_v18  ;;  %v657_v4 = vpop.f32.mrf.mxu0  ;;  %v799_v0 = vmax.f32 %v761_v36, 0.0  ;;  %v797_v54 = vmax.f32 %v751_v62, 0.0 }
 0x136   : > { %v767_v5 = vpop.f32.mrf.mxu1 }
 0x137   : > { %v800_v6 = vmax.f32 %v766_v3, 0.0  ;;  %v660_v7 = vpop.f32.mrf.mxu0  ;;  %v798_v5 = vmax.f32 %v756_v52, 0.0 }
 0x138   : > { %v661_v48 = vadd.f32 %v660_v7, %v437_v57  ;;  %v482_v57 = vpop.permute.xlu0 %481  ;;  %v726_v7 = vadd.f32 %v1803_v22, %v502_v19 }
 0x139   : > { %1129 = vmatprep.subr.mxu1 %v800_v6  ;;  %v662_v8 = vpop.f32.mrf.mxu0 }
 0x13b   : > { %v665_v11 = vpop.f32.mrf.mxu0 }
 0x13d   : > { %v667_v12 = vpop.f32.mrf.mxu0 }
 0x13f   : > { %v670_v13 = vpop.f32.mrf.mxu0 }
 0x140   : > { %v671_v4 = vadd.f32 %v670_v13, %v447_v41  ;;  %v656_v13 = vadd.f32 %v655_v63, %v432_v1  ;;  %v646_v63 = vadd.f32 %v1827_v53, %v422_v14  ;;  %v477_v53 = vpop.permute.xlu0 %476 }
 0x141   : > { %v672_v20 = vpop.f32.mrf.mxu0 }
 0x142   : > { %v781_v41 = vmax.f32 %v671_v4, 0.0  ;;  %v778_v1 = vmax.f32 %v656_v13, 0.0  ;;  %v776_v19 = vmax.f32 %v646_v63, 0.0  ;;  %v807_v13 = vld [vmem:[%s1978_s3 + $0x30] sm:$0xff] }
 0x143   : > { %v675_v23 = vpop.f32.mrf.mxu0  ;;  %v819_v63 = vld [vmem:[%s1978_s3 + $0x90] sm:$0xff] }
 0x144   : > { %v676_v56 = vadd.f32 %v675_v23, %v1817_v33  ;;  %v741_v33 = vadd.f32 %v1821_v38, %v517_v58  ;;  %v651_v58 = vadd.f32 %v1829_v59, %v427_v9  ;;  %v641_v59 = vadd.f32 %v1825_v47, %v1831_v29 }
 0x145   : > { %v677_v24 = vpop.f32.mrf.mxu0  ;;  %v636_v47 = vadd.f32 %v1823_v43, %v1834_v40 }
 0x146   : > { %v782_v8 = vmax.f32 %v676_v56, 0.0  ;;  %v779_v24 = vmax.f32 %v661_v48, 0.0  ;;  %v777_v9 = vmax.f32 %v651_v58, 0.0  ;;  %v813_v58 = vld [vmem:[%s1978_s3 + $0x60] sm:$0xff] }
 0x147   : > { %v680_v18 = vpop.f32.mrf.mxu0 }
 0x148   : > { %v681_v45 = vadd.f32 %v680_v18, %v1805_v25  ;;  %v1843_v25 = vpop.permute.xlu1 %406 }
 0x149   : > { %v682_v35 = vpop.f32.mrf.mxu0  ;;  %v631_v56 = vadd.f32 %v1819_v37, %v1843_v25 }
 0x14a   : > { %v783_v17 = vmax.f32 %v681_v45, 0.0  ;;  %v792_v35 = vmax.f32 %v726_v7, 0.0  ;;  %v775_v45 = vmax.f32 %v641_v59, 0.0  ;;  %v818_v7 = vld [vmem:[%s1978_s3 + $0x88] sm:$0xff] }
 0x14b   : > { %v685_v39 = vpop.f32.mrf.mxu0  ;;  %v773_v40 = vmax.f32 %v631_v56, 0.0 }
 0x14c   : > { %v686_v46 = vadd.f32 %v685_v39, %v1807_v26  ;;  %v666_v26 = vadd.f32 %v665_v11, %v442_v49  ;;  %v731_v49 = vadd.f32 %v1811_v28, %v507_v10  ;;  %v795_v11 = vmax.f32 %v741_v33, 0.0  ;;  %v402_v38 = vpop.permute.xlu1 %401 }
 0x14d   : > { %v687_v55 = vpop.f32.mrf.mxu0  ;;  %v721_v28 = vadd.f32 %v1797_v16, %v497_v30  ;;  %v626_v4 = vadd.f32 %v1813_v31, %v402_v38  ;;  %v814_v38 = vld [vmem:[%s1978_s3 + $0x68] sm:$0xff] }
 0x14e   : > { %v784_v61 = vmax.f32 %v686_v46, 0.0  ;;  %v780_v20 = vmax.f32 %v666_v26, 0.0  ;;  %v793_v10 = vmax.f32 %v731_v49, 0.0  ;;  %v472_v55 = vpop.permute.xlu0 %471  ;;  %v809_v49 = vld [vmem:[%s1978_s3 + $0x40] sm:$0xff] }
 0x14f   : > { %v1841_v3 = vpop.f32.mrf.mxu0  ;;  %v791_v39 = vmax.f32 %v721_v28, 0.0  ;;  %v772_v25 = vmax.f32 %v626_v4, 0.0  ;;  %v821_v28 = vld [vmem:[%s1978_s3 + $0xa0] sm:$0xff] }
 0x150   : > { %1130 = vmatpush3.msra.mxu1 %v784_v61  ;;  %v397_v22 = vpop.permute.xlu1 %396 }
 0x151   : > { %v692_v6 = vpop.f32.mrf.mxu0  ;;  %1131 = vmatprep.subr.mxu1 %v799_v0  ;;  %v621_v43 = vadd.f32 %v1809_v27, %v397_v22 }
 0x152   : > { %1132 = vmatpush3.msra.mxu1 %v783_v17  ;;  %v774_v17 = vmax.f32 %v636_v47, 0.0 }
 0x153   : > { %v1846_v42 = vpop.f32.mrf.mxu0  ;;  %1133 = vmatprep.subr.mxu1 %v798_v5 }
 0x154   : > { %1134 = vmatpush3.msra.mxu1 %v782_v8  ;;  %v392_v30 = vpop.permute.xlu1 %391  ;;  %v467_v8 = vpop.permute.xlu0 %466 }
 0x155   : > { %v697_v12 = vpop.f32.mrf.mxu0  ;;  %1135 = vmatprep.subr.mxu1 %v797_v54  ;;  %v616_v37 = vadd.f32 %v1801_v21, %v392_v30  ;;  %v691_v31 = vadd.f32 %v1841_v3, %v467_v8  ;;  %v771_v54 = vmax.f32 %v621_v43, 0.0  ;;  %v801_v21 = vld [vmem:[%s1978_s3] sm:$0xff]  ;;  %v804_v3 = vld [vmem:[%s1978_s3 + $0x18] sm:$0xff] }
 0x156   : > { %1136 = vmatpush3.msra.mxu1 %v781_v41  ;;  %v808_v12 = vld [vmem:[%s1978_s3 + $0x38] sm:$0xff] }
 0x157   : > { %v700_v23 = vpop.f32.mrf.mxu0  ;;  %1137 = vmatprep.subr.mxu1 %v796_v50  ;;  %v770_v48 = vmax.f32 %v616_v37, 0.0  ;;  %v805_v50 = vld [vmem:[%s1978_s3 + $0x20] sm:$0xff] }
 0x158   : > { %1138 = vmatpush3.msra.mxu1 %v780_v20  ;;  %v701_v60 = vadd.f32 %v700_v23, %v477_v53  ;;  %v387_v6 = vpop.permute.xlu1 %386  ;;  %v810_v20 = vld [vmem:[%s1978_s3 + $0x48] sm:$0xff]  ;;  %v811_v23 = vld [vmem:[%s1978_s3 + $0x50] sm:$0xff] }
 0x159   : > { %v702_v2 = vpop.f32.mrf.mxu0  ;;  %1139 = vmatprep.subr.mxu1 %v795_v11  ;;  %v611_v33 = vadd.f32 %v1795_v15, %v387_v6  ;;  %v803_v15 = vld [vmem:[%s1978_s3 + $0x10] sm:$0xff]  ;;  %v812_v11 = vld [vmem:[%s1978_s3 + $0x58] sm:$0xff] }
 0x15a   : > { %1140 = vmatpush3.msra.mxu1 %v779_v24  ;;  %v816_v24 = vld [vmem:[%s1978_s3 + $0x78] sm:$0xff] }
 0x15b   : > { %v705_v18 = vpop.f32.mrf.mxu0  ;;  %1141 = vmatprep.subr.mxu1 %v794_v32  ;;  %v769_v41 = vmax.f32 %v611_v33, 0.0  ;;  %v817_v32 = vld [vmem:[%s1978_s3 + $0x80] sm:$0xff]  ;;  %v820_v2 = vld [vmem:[%s1978_s3 + $0x98] sm:$0xff] }
 0x15c   : > { %1142 = vmatpush3.msra.mxu1 %v778_v1  ;;  %v706_v62 = vadd.f32 %v705_v18, %v482_v57  ;;  %v815_v57 = vld [vmem:[%s1978_s3 + $0x70] sm:$0xff]  ;;  %v822_v1 = vld [vmem:[%s1978_s3 + $0xa8] sm:$0xff] }
 0x15d   : > { %v707_v36 = vpop.f32.mrf.mxu0  ;;  %1143 = vmatprep.subr.mxu1 %v793_v10  ;;  %v824_v10 = vld [vmem:[%s1978_s3 + $0xb8] sm:$0xff]  ;;  %v823_v18 = vld [vmem:[%s1978_s3 + $0xb0] sm:$0xff] }
 0x15e   : > { %1144 = vmatpush3.msra.mxu1 %v777_v9  ;;  %v788_v26 = vmax.f32 %v706_v62, 0.0  ;;  %v840_v36 = vpop.permute.xlu0 %839 }
 0x15f   : > { %v710_v14 = vpop.f32.mrf.mxu0  ;;  %1145 = vmatprep.subr.mxu1 %v792_v35 }
 0x160   : > { %1146 = vmatpush3.msra.mxu1 %v776_v19  ;;  %v711_v46 = vadd.f32 %v710_v14, %v487_v34  ;;  %v787_v34 = vmax.f32 %v701_v60, 0.0  ;;  %v845_v14 = vpop.permute.xlu1 %844 }
 0x161   : > { %v712_v16 = vpop.f32.mrf.mxu0  ;;  %1147 = vmatprep.subr.mxu1 %v791_v39 }
 0x162   : > { %1148 = vmatpush3.msra.mxu1 %v775_v45  ;;  %v789_v5 = vmax.f32 %v711_v46, 0.0  ;;  %v850_v30 = vpop.permute.xlu0 %849 }
 0x163   : > { %v715_v29 = vpop.f32.mrf.mxu0 }
 0x164   : > { %v716_v52 = vadd.f32 %v715_v29, %v1838_v51  ;;  %v696_v51 = vadd.f32 %v1846_v42, %v472_v55  ;;  %v785_v42 = vmax.f32 %v691_v31, 0.0 }
 0x165   : > { %v717_v61 = vpop.f32.mrf.mxu0 }
 0x166   : > { %v790_v0 = vmax.f32 %v716_v52, 0.0  ;;  %v786_v27 = vmax.f32 %v696_v51, 0.0  ;;  %v855_v61 = vpop.permute.xlu1 %854  ;;  %v860_v60 = vpop.permute.xlu0 %859 }
 0x168   : > { %1149 = vmatprep.subr.mxu1 %v790_v0 }
 0x169   : > { %1150 = vmatpush3.msra.mxu1 %v774_v17 }
 0x16a   : > { %1151 = vmatprep.subr.mxu1 %v789_v5  ;;  %v865_v51 = vpop.permute.xlu1 %864  ;;  %v870_v31 = vpop.permute.xlu0 %869 }
 0x16b   : > { %1152 = vmatpush3.msra.mxu1 %v773_v40 }
 0x16c   : > { %1153 = vmatprep.subr.mxu1 %v788_v26 }
 0x16d   : > { %1154 = vmatpush3.msra.mxu1 %v772_v25 }
 0x16e   : > { %1155 = vmatprep.subr.mxu1 %v787_v34 }
 0x16f   : > { %1156 = vmatpush3.msra.mxu1 %v771_v54 }
 0x170   : > { %1157 = vmatprep.subr.mxu1 %v786_v27 }
 0x171   : > { %1158 = vmatpush3.msra.mxu1 %v770_v48  ;;  %v875_v48 = vpop.permute.xlu1 %874 }
 0x172   : > { %1159 = vmatprep.subr.mxu1 %v785_v42 }
 0x173   : > { %1160 = vmatpush3.msra.mxu1 %v769_v41 }
 0x174   : > { %962 = vmatmul.mubr.f32.vlgmr.msra.gmra.mxu1 %v801_v21 }
 0x175   : > { %966 = vmatprep.mubr.f32.mxu1 %v804_v3 }
 0x178   : > { %967 = vmatmul.mubr.f32.gmra.mxu1 %v803_v15  ;;  %v880_v15 = vpop.permute.xlu0 %879 }
 0x179   : > { %971 = vmatprep.mubr.f32.mxu1 %v806_v44 }
 0x17c   : > { %972 = vmatmul.mubr.f32.gmra.mxu1 %v805_v50 }
 0x17d   : > { %976 = vmatprep.mubr.f32.mxu1 %v808_v12 }
 0x180   : > { %977 = vmatmul.mubr.f32.gmra.mxu1 %v807_v13 }
 0x181   : > { %981 = vmatprep.mubr.f32.mxu1 %v810_v20  ;;  %v885_v20 = vpop.permute.xlu1 %884 }
 0x184   : > { %982 = vmatmul.mubr.f32.gmra.mxu1 %v809_v49 }
 0x185   : > { %986 = vmatprep.mubr.f32.mxu1 %v812_v11 }
 0x188   : > { %987 = vmatmul.mubr.f32.gmra.mxu1 %v811_v23 }
 0x189   : > { %991 = vmatprep.mubr.f32.mxu1 %v814_v38 }
 0x18c   : > { %992 = vmatmul.mubr.f32.gmra.mxu1 %v813_v58  ;;  %v890_v58 = vpop.permute.xlu0 %889 }
 0x18d   : > { %996 = vmatprep.mubr.f32.mxu1 %v816_v24 }
 0x190   : > { %997 = vmatmul.mubr.f32.gmra.mxu1 %v815_v57 }
 0x191   : > { %1001 = vmatprep.mubr.f32.mxu1 %v818_v7 }
 0x194   : > { %1002 = vmatmul.mubr.f32.gmra.mxu1 %v817_v32 }
 0x195   : > { %1006 = vmatprep.mubr.f32.mxu1 %v820_v2  ;;  %v895_v2 = vpop.permute.xlu1 %894 }
 0x198   : > { %1007 = vmatmul.mubr.f32.gmra.mxu1 %v819_v63 }
 0x199   : > { %1011 = vmatprep.mubr.f32.mxu1 %v822_v1 }
 0x19c   : > { %1012 = vmatmul.mubr.f32.gmra.mxu1 %v821_v28 }
 0x19d   : > { %1016 = vmatprep.mubr.f32.mxu1 %v824_v10 }
 0x1a0   : > { %1017 = vmatmul.mubr.f32.gmra.mxu1 %v823_v18 }
 0x234   : > { %v1161_v59 = vpop.f32.mrf.mxu1 }
 0x236   : > { %v1162_v9 = vpop.f32.mrf.mxu1 }
 0x237   : > { %v1163_v35 = vadd.f32 %v1162_v9, %v1161_v59 }
 0x238   : > { %v1164_v22 = vpop.f32.mrf.mxu1 }
 0x239   : > { %v964_v19 = vadd.f32 %v1163_v35, %v840_v36 }
 0x23a   : > { %v1165_v39 = vpop.f32.mrf.mxu1 }
 0x23b   : > { %1023 = vst.msk [vmem:[%s1940_s16] sm:$0xff] %vm1022_vm0, %v964_v19  ;;  %v1166_v53 = vadd.f32 %v1165_v39, %v1164_v22 }
 0x23c   : > { %v1167_v45 = vpop.f32.mrf.mxu1 }
 0x23d   : > { %v969_v16 = vadd.f32 %v1166_v53, %v845_v14 }
 0x23e   : > { %v1168_v47 = vpop.f32.mrf.mxu1 }
 0x23f   : > { %1024 = vst.msk [vmem:[%s1940_s16 + $0x8] sm:$0xff] %vm1022_vm0, %v969_v16  ;;  %v1169_v29 = vadd.f32 %v1168_v47, %v1167_v45 }
 0x240   : > { %v1170_v46 = vpop.f32.mrf.mxu1 }
 0x241   : > { %v974_v52 = vadd.f32 %v1169_v29, %v850_v30 }
 0x242   : > { %v1171_v55 = vpop.f32.mrf.mxu1 }
 0x243   : > { %1025 = vst.msk [vmem:[%s1940_s16 + $0x10] sm:$0xff] %vm1022_vm0, %v974_v52  ;;  %v1172_v56 = vadd.f32 %v1171_v55, %v1170_v46 }
 0x244   : > { %v1173_v62 = vpop.f32.mrf.mxu1 }
 0x245   : > { %v979_v0 = vadd.f32 %v1172_v56, %v855_v61 }
 0x246   : > { %v1174_v4 = vpop.f32.mrf.mxu1 }
 0x247   : > { %1026 = vst.msk [vmem:[%s1940_s16 + $0x18] sm:$0xff] %vm1022_vm0, %v979_v0  ;;  %v1175_v17 = vadd.f32 %v1174_v4, %v1173_v62 }
 0x248   : > { %v1176_v5 = vpop.f32.mrf.mxu1 }
 0x249   : > { %v984_v43 = vadd.f32 %v1175_v17, %v860_v60 }
 0x24a   : > { %v1177_v40 = vpop.f32.mrf.mxu1 }
 0x24b   : > { %1027 = vst.msk [vmem:[%s1940_s16 + $0x20] sm:$0xff] %vm1022_vm0, %v984_v43  ;;  %v1178_v6 = vadd.f32 %v1177_v40, %v1176_v5 }
 0x24c   : > { %v1179_v26 = vpop.f32.mrf.mxu1 }
 0x24d   : > { %v989_v37 = vadd.f32 %v1178_v6, %v865_v51 }
 0x24e   : > { %v1180_v25 = vpop.f32.mrf.mxu1 }
 0x24f   : > { %1028 = vst.msk [vmem:[%s1940_s16 + $0x28] sm:$0xff] %vm1022_vm0, %v989_v37  ;;  %v1181_v8 = vadd.f32 %v1180_v25, %v1179_v26 }
 0x250   : > { %v1182_v34 = vpop.f32.mrf.mxu1 }
 0x251   : > { %v994_v33 = vadd.f32 %v1181_v8, %v870_v31 }
 0x252   : > { %v1183_v54 = vpop.f32.mrf.mxu1 }
 0x253   : > { %1029 = vst.msk [vmem:[%s1940_s16 + $0x30] sm:$0xff] %vm1022_vm0, %v994_v33  ;;  %v1184_v27 = vadd.f32 %v1183_v54, %v1182_v34 }
 0x254   : > { %v1185_v42 = vpop.f32.mrf.mxu1 }
 0x255   : > { %v999_v41 = vadd.f32 %v1184_v27, %v875_v48 }
 0x256   : > { %v1186_v21 = vpop.f32.mrf.mxu1 }
 0x257   : > { %1030 = vst.msk [vmem:[%s1940_s16 + $0x38] sm:$0xff] %vm1022_vm0, %v999_v41  ;;  %v1187_v3 = vadd.f32 %v1186_v21, %v1185_v42 }
 0x258   : > { %v1188_v44 = vpop.f32.mrf.mxu1 }
 0x259   : > { %v1004_v50 = vadd.f32 %v1187_v3, %v880_v15 }
 0x25a   : > { %v1189_v12 = vpop.f32.mrf.mxu1 }
 0x25b   : > { %1031 = vst.msk [vmem:[%s1940_s16 + $0x40] sm:$0xff] %vm1022_vm0, %v1004_v50  ;;  %v1190_v13 = vadd.f32 %v1189_v12, %v1188_v44 }
 0x25c   : > { %v1191_v49 = vpop.f32.mrf.mxu1 }
 0x25d   : > { %v1009_v11 = vadd.f32 %v1190_v13, %v885_v20 }
 0x25e   : > { %v1192_v23 = vpop.f32.mrf.mxu1 }
 0x25f   : > { %1032 = vst.msk [vmem:[%s1940_s16 + $0x48] sm:$0xff] %vm1022_vm0, %v1009_v11  ;;  %v1193_v38 = vadd.f32 %v1192_v23, %v1191_v49 }
 0x260   : > { %v1194_v24 = vpop.f32.mrf.mxu1 }
 0x261   : > { %v1014_v57 = vadd.f32 %v1193_v38, %v890_v58 }
 0x262   : > { %v1195_v7 = vpop.f32.mrf.mxu1 }
 0x263   : > { %1033 = vst.msk [vmem:[%s1940_s16 + $0x50] sm:$0xff] %vm1022_vm0, %v1014_v57  ;;  %v1196_v32 = vadd.f32 %v1195_v7, %v1194_v24 }
 0x265   : > { %v1019_v63 = vadd.f32 %v1196_v32, %v895_v2 }
 0x267   : > { %1034 = vst.msk [vmem:[%s1940_s16 + $0x58] sm:$0xff] %vm1022_vm0, %v1019_v63 }
 0x268 PF: > { %s15_s20 = sadd.s32 1, %s1312_s20   ;;  %s1981_s18 = smov %s1308_s19 }
 0x269   : > { %p12_p5 = scmp.ge.s32.totalorder %s15_s20, 4   ;;  %s1982_s19 = smov %s1984_s21 }
 0x26b   :  { %14 = sbr.rel (!%p12_p5) target bundleno = 2 (0x2), region = 70 }

</bundles_post_ra>
